<compile_context>
chip_gen: v5e
topology: v5e:2x2
jax: 0.10.0
libtpu: 0.0.40
codegen_flags: <defaults>
</compile_context>

<pallas_src>
import functools

import jax
import jax.numpy as jnp
from jax.experimental import pallas as pl
from jax.experimental.pallas import tpu as pltpu

K_PROP = 4
ALPHA = 0.0
LANE = 128


# -------------------- propagation kernel:  out = Â @ h + bias --------------------
def _prop_kernel(a_ref, h_ref, b_ref, out_ref, acc_ref):
    k = pl.program_id(1)

    @pl.when(k == 0)
    def _():
        acc_ref[...] = jnp.zeros_like(acc_ref)

    acc_ref[...] += jnp.dot(a_ref[...], h_ref[...],
                            preferred_element_type=jnp.float32)

    @pl.when(k == pl.num_programs(1) - 1)
    def _():
        out_ref[...] = (acc_ref[...] + b_ref[...]).astype(out_ref.dtype)


def _propagate(a16, h16, bias, *, tm, tk, out_dtype):
    n = a16.shape[0]
    f = h16.shape[1]
    return pl.pallas_call(
        _prop_kernel,
        out_shape=jax.ShapeDtypeStruct((n, f), out_dtype),
        grid_spec=pltpu.PrefetchScalarGridSpec(
            num_scalar_prefetch=0,
            grid=(n // tm, n // tk),
            in_specs=[
                pl.BlockSpec((tm, tk), lambda i, k: (i, k)),   # Â row/col tile (bf16)
                pl.BlockSpec((tk, f), lambda i, k: (k, 0)),    # h rows for this k-tile
                pl.BlockSpec((1, f), lambda i, k: (0, 0)),     # bias
            ],
            out_specs=pl.BlockSpec((tm, f), lambda i, k: (i, 0)),
            scratch_shapes=[pltpu.VMEM((tm, f), jnp.float32)],
        ),
        compiler_params=pltpu.CompilerParams(
            dimension_semantics=("parallel", "arbitrary")),
    )(a16, h16, bias)


# -------------------- projection kernel:  out = h @ W --------------------
def _proj_kernel(h_ref, w_ref, out_ref):
    out_ref[...] = jnp.dot(h_ref[...], w_ref[...],
                           preferred_element_type=jnp.float32).astype(out_ref.dtype)


def _project(h16, w16, *, tm, out_dtype):
    n, fin = h16.shape
    fout = w16.shape[1]
    return pl.pallas_call(
        _proj_kernel,
        out_shape=jax.ShapeDtypeStruct((n, fout), out_dtype),
        grid_spec=pltpu.PrefetchScalarGridSpec(
            num_scalar_prefetch=0,
            grid=(n // tm,),
            in_specs=[
                pl.BlockSpec((tm, fin), lambda i: (i, 0)),
                pl.BlockSpec((fin, fout), lambda i: (0, 0)),
            ],
            out_specs=pl.BlockSpec((tm, fout), lambda i: (i, 0)),
        ),
        compiler_params=pltpu.CompilerParams(dimension_semantics=("parallel",)),
    )(h16, w16)


def appnp_forward(a_hat, x, w1, b1, w2, b2, *, tm=128, tk=128):
    """Fused APPNP forward (eval mode) on a dense symmetrically-normalized adjacency."""
    n = a_hat.shape[0]
    hidden = w1.shape[1]
    out_dim = w2.shape[1]
    tm = min(tm, n)
    tk = min(tk, n)
    assert n % tm == 0 and n % tk == 0, "N must be divisible by the tile sizes"

    a16 = a_hat.astype(jnp.bfloat16)          # Â is streamed 6x -> bf16 halves the bytes

    # --- GraphConv 1:  Â (X W1) + b1  (project first: in_dim is the narrow side) ---
    p = _project(x.astype(jnp.bfloat16), w1.astype(jnp.bfloat16),
                 tm=tm, out_dtype=jnp.bfloat16)
    b1_row = b1.reshape(1, hidden).astype(jnp.float32)
    h = _propagate(a16, p, b1_row, tm=tm, tk=tk, out_dtype=jnp.bfloat16)

    # --- dropout (eval mode) == identity ---

    # --- APPNPConv, k=4, alpha=0:  h <- Â h   (alpha==0 branch stripped at trace) ---
    zero_bias = jnp.zeros((1, hidden), jnp.float32)
    if ALPHA == 0.0:
        for _ in range(K_PROP):
            h = _propagate(a16, h, zero_bias, tm=tm, tk=tk, out_dtype=jnp.bfloat16)
    else:  # generic APPNP (not exercised by this module's alpha=0.0)
        h0 = h.astype(jnp.float32)
        for _ in range(K_PROP):
            prop = _propagate(a16, h, zero_bias, tm=tm, tk=tk, out_dtype=jnp.float32)
            h = ((1.0 - ALPHA) * prop + ALPHA * h0).astype(jnp.bfloat16)

    # --- dropout (eval mode) == identity ---

    # --- GraphConv 2:  Â (h W2) + b2, re-associated; out_dim padded to 128 lanes ---
    out_pad = ((out_dim + LANE - 1) // LANE) * LANE
    w2_pad = jnp.zeros((hidden, out_pad), jnp.bfloat16).at[:, :out_dim].set(
        w2.astype(jnp.bfloat16))
    b2_pad = jnp.zeros((1, out_pad), jnp.float32).at[0, :out_dim].set(
        b2.astype(jnp.float32))
    q = _project(h, w2_pad, tm=tm, out_dtype=jnp.bfloat16)
    out = _propagate(a16, q, b2_pad, tm=tm, tk=tk, out_dtype=jnp.float32)
    return out[:, :out_dim]


# -------------------- references --------------------
def reference_forward_f32(a_hat, x, w1, b1, w2, b2):
    h = a_hat @ (x @ w1) + b1
    h0 = h
    for _ in range(K_PROP):
        h = (1.0 - ALPHA) * (a_hat @ h) + ALPHA * h0
    return a_hat @ (h @ w2) + b2


def reference_forward_mixed(a_hat, x, w1, b1, w2, b2):
    """Same bf16-operand / f32-accumulate precision policy as the kernels."""
    a16 = a_hat.astype(jnp.bfloat16)
    dot = functools.partial(jnp.dot, preferred_element_type=jnp.float32)
    p = dot(x.astype(jnp.bfloat16), w1.astype(jnp.bfloat16)).astype(jnp.bfloat16)
    h = (dot(a16, p) + b1).astype(jnp.bfloat16)
    for _ in range(K_PROP):
        h = dot(a16, h).astype(jnp.bfloat16)
    q = dot(h, w2.astype(jnp.bfloat16)).astype(jnp.bfloat16)
    return dot(a16, q) + b2


def make_normalized_adjacency(key, n):
    # Deterministic random undirected graph, symmetric normalization D^-1/2 A D^-1/2.
    a = (jax.random.uniform(key, (n, n)) < 0.1).astype(jnp.float32)
    a = jnp.maximum(a, a.T)
    a = a * (1.0 - jnp.eye(n, dtype=jnp.float32))  # no self loops (DGL default)
    deg = jnp.maximum(a.sum(axis=1), 1.0)
    d_inv_sqrt = 1.0 / jnp.sqrt(deg)
    return a * d_inv_sqrt[:, None] * d_inv_sqrt[None, :]


if __name__ == "__main__":
    # N=256 nodes so the (128, 128) Â tiling actually exercises the 2x2 grid.
    N, IN_DIM, HIDDEN_DIM, OUT_DIM = 256, 16, 32, 8
    key = jax.random.PRNGKey(0)
    k_adj, k_x, k_w1, k_b1, k_w2, k_b2 = jax.random.split(key, 6)

    a_hat = make_normalized_adjacency(k_adj, N)
    features = jax.random.normal(k_x, (N, IN_DIM), dtype=jnp.float32)

    w1 = 0.1 * jax.random.normal(k_w1, (IN_DIM, HIDDEN_DIM), dtype=jnp.float32)
    b1 = 0.1 * jax.random.normal(k_b1, (HIDDEN_DIM,), dtype=jnp.float32)
    w2 = 0.1 * jax.random.normal(k_w2, (HIDDEN_DIM, OUT_DIM), dtype=jnp.float32)
    b2 = 0.1 * jax.random.normal(k_b2, (OUT_DIM,), dtype=jnp.float32)

    out = appnp_forward(a_hat, features, w1, b1, w2, b2)
    jax.block_until_ready(out)
    assert out.shape == (N, OUT_DIM)

    ref_mixed = reference_forward_mixed(a_hat, features, w1, b1, w2, b2)
    assert jnp.allclose(out, ref_mixed, atol=2e-3, rtol=2e-3), (
        "max |err| vs mixed-precision ref = "
        f"{float(jnp.max(jnp.abs(out - ref_mixed)))}")

    ref_f32 = reference_forward_f32(a_hat, features, w1, b1, w2, b2)
    assert jnp.allclose(out, ref_f32, atol=5e-2, rtol=5e-2), (
        "max |err| vs f32 ref = "
        f"{float(jnp.max(jnp.abs(out - ref_f32)))}")

    print("KERNEL_OK")
</pallas_src>

<mosaic_0001>
module attributes {stable_mosaic.version = 11 : i64} {
  func.func @_proj_kernel(%arg0: i32, %arg1: memref<128x16xbf16, #tpu.memory_space<vmem>>, %arg2: memref<16x32xbf16, #tpu.memory_space<vmem>>, %arg3: memref<128x32xbf16, #tpu.memory_space<vmem>>) attributes {dimension_semantics = [#tpu.dimension_semantics<parallel>], iteration_bounds = array<i64: 2>, scalar_prefetch = 0 : i64, scratch_operands = 0 : i64, tpu.core_type = #tpu.core_type<tc>, window_params = [{transform_indices = @transform_0, window_bounds = array<i64: 128, 16>}, {pipeline_mode = #tpu.pipeline_mode<synchronous>, transform_indices = @transform_1, window_bounds = array<i64: 16, 32>}, {transform_indices = @transform_2, window_bounds = array<i64: 128, 32>}]} {
    %c0 = arith.constant 0 : index
    %c0_0 = arith.constant 0 : index
    %0 = vector.load %arg1[%c0, %c0_0] : memref<128x16xbf16, #tpu.memory_space<vmem>>, vector<128x16xbf16>
    %c0_1 = arith.constant 0 : index
    %c0_2 = arith.constant 0 : index
    %1 = vector.load %arg2[%c0_1, %c0_2] : memref<16x32xbf16, #tpu.memory_space<vmem>>, vector<16x32xbf16>
    %cst = arith.constant dense<0.000000e+00> : vector<128x32xf32>
    %2 = tpu.matmul %0, %1, %cst {dimension_numbers = #tpu.dot_dimension_numbers<[1], [0], [0], [1], [0, 0, 1, 1], [], []>} : vector<128x16xbf16>, vector<16x32xbf16>, vector<128x32xf32> -> vector<128x32xf32>
    %3 = arith.truncf %2 : vector<128x32xf32> to vector<128x32xbf16>
    %c0_3 = arith.constant 0 : index
    %c0_4 = arith.constant 0 : index
    %4 = vector.load %arg3[%c0_3, %c0_4] : memref<128x32xbf16, #tpu.memory_space<vmem>>, vector<128x32xbf16>
    tpu.vector_store %arg3[%c0_3, %c0_4], %3 {strides = array<i32>} : memref<128x32xbf16, #tpu.memory_space<vmem>>, vector<128x32xbf16>,
    return
  }
  func.func @transform_0(%arg0: i32) -> (i32, i32) {
    %c0_i32 = arith.constant 0 : i32
    %c0_i32_0 = arith.constant 0 : i32
    return %arg0, %c0_i32 : i32, i32
  }
  func.func @transform_1(%arg0: i32) -> (i32, i32) {
    %c0_i32 = arith.constant 0 : i32
    %c0_i32_0 = arith.constant 0 : i32
    %c0_i32_1 = arith.constant 0 : i32
    return %c0_i32, %c0_i32_0 : i32, i32
  }
  func.func @transform_2(%arg0: i32) -> (i32, i32) {
    %c0_i32 = arith.constant 0 : i32
    %c0_i32_0 = arith.constant 0 : i32
    return %arg0, %c0_i32 : i32, i32
  }
}

</mosaic_0001>

<bundles_post_ra>
// kernel: tpu_custom_call.1
= control target key start
LH: loop header
LB: loop body
LE: loop exit
PB: predicated region body
PF: predicated region fallthrough
CT: control target
= control target key end

     0   :  { %s473_s9 = smov 0   ;;  %s535_s0 = inlined_call_operand.vmem [shape: bf16[256,16], index: 0, kind: input, shape index: {}]   ;;  %s536_s1 = inlined_call_operand.vmem [shape: bf16[16,32], index: 1, kind: input, shape index: {}]   ;;  %s537_s2 = inlined_call_operand.vmem [shape: bf16[256,32], index: 2, kind: output, shape index: {}]  }
   0x1 LB: > { %s375_s10 = sadd.s32 4294967295, %s456_s9   ;;  %p379_p0 = scmp.ge.s32.totalorder %s456_s9, 1  ;;  %s456_s9 = sphi %s473_s9, %s12_s9  }
   0x2   : > { %p113_p1 = scmp.lt.s32.totalorder %s456_s9, 3 }
   0x4   : > { %p114_p2 = pnand %p379_p0, %p113_p1 }
   0x5   : > { %s380_s13 = sshll.u32 (!%p114_p2), %s375_s10, 4 }
   0x6   : > { %117 = sbr.rel (%p114_p2) target bundleno = 176 (0xb0), region = 28  ;;  %p136_p3 = scmp.lt.s32.totalorder (!%p114_p2), %s380_s13, 31 }
   0xb   : > { %v438_v0 = vld [vmem:[%s536_s1] sm:$0xff]  ;;  %s539_s13 = smov (!%p136_p3, %s380_s13), 31  ;;  %vm212_vm0 = vcmask 130048   ;;  %vm302_vm1 = vcmask 257024  }
   0xc   : > { %244 = vmatpush.bf16.msra.mxu0 %v438_v0  ;;  %439 = vmatpush.bf16.msra.mxu1 %v438_v0  ;;  %s381_s14 = sshll.u32 %s539_s13, 2 }
   0xd   : > { %440 = vmatpush.bf16.msra.mxu2 %v438_v0  ;;  %441 = vmatpush.bf16.msra.mxu3 %v438_v0  ;;  %s139_s17 = scalar_lea.vmem %s535_s0, %s381_s14  ;;  %s498_s20 = scalar_lea.vmem %s537_s2, %s381_s14 }
   0xe   : > { %v430_v1 = vld [vmem:[%s139_s17] sm:$0xff]  ;;  %v432_v2 = vld [vmem:[%s139_s17 + $0x10] sm:$0xff]  ;;  %v431_v5 = vld [vmem:[%s139_s17 + $0x8] sm:$0xff] }
   0xf   : > { %v434_v3 = vld [vmem:[%s139_s17 + $0x20] sm:$0xff]  ;;  %v436_v4 = vld [vmem:[%s139_s17 + $0x30] sm:$0xff]  ;;  %420 = vmatmul.msk.bf16.vlgmr.msra.gmra.mxu0 %vm212_vm0, %v430_v1  ;;  %422 = vmatmul.msk.bf16.vlgmr.msra.gmra.mxu1 %vm212_vm0, %v432_v2  ;;  %v433_v6 = vld [vmem:[%s139_s17 + $0x18] sm:$0xff] }
  0x10   : > { %424 = vmatmul.msk.bf16.vlgmr.msra.gmra.mxu2 %vm212_vm0, %v434_v3  ;;  %426 = vmatmul.msk.bf16.vlgmr.msra.gmra.mxu3 %vm212_vm0, %v436_v4  ;;  %v435_v7 = vld [vmem:[%s139_s17 + $0x28] sm:$0xff]  ;;  %v437_v8 = vld [vmem:[%s139_s17 + $0x38] sm:$0xff] }
  0x1f   : > { %421 = vmatmul.msk.bf16.gmra.mxu0 %vm212_vm0, %v431_v5  ;;  %423 = vmatmul.msk.bf16.gmra.mxu1 %vm212_vm0, %v433_v6 }
  0x20   : > { %425 = vmatmul.msk.bf16.gmra.mxu2 %vm212_vm0, %v435_v7  ;;  %427 = vmatmul.msk.bf16.gmra.mxu3 %vm212_vm0, %v437_v8 }
  0x8c   : > { %v246_v9 = vpop.f32.mrf.mxu0  ;;  %v256_v10 = vpop.f32.mrf.mxu1 }
  0x8d   : > { %v286_v11 = vpack.c.bf16 %v246_v9, %v246_v9  ;;  %v290_v12 = vpack.c.bf16 %v256_v10, %v256_v10 }
  0x8f   : > { %303 = vst.msk [vmem:[%s498_s20] sm:$0xf] %vm302_vm1, %v286_v11 }
  0x90   : > { %307 = vst.msk [vmem:[%s498_s20 + $0x10] sm:$0xf] %vm302_vm1, %v290_v12 }
  0x93   : > { %v266_v13 = vpop.f32.mrf.mxu2  ;;  %v276_v14 = vpop.f32.mrf.mxu3 }
  0x94   : > { %v294_v15 = vpack.c.bf16 %v266_v13, %v266_v13  ;;  %v298_v16 = vpack.c.bf16 %v276_v14, %v276_v14  ;;  %v248_v17 = vpop.f32.mrf.mxu0  ;;  %v258_v18 = vpop.f32.mrf.mxu1 }
  0x95   : > { %v287_v19 = vpack.c.bf16 %v248_v17, %v248_v17  ;;  %v291_v20 = vpack.c.bf16 %v258_v18, %v258_v18 }
  0x96   : > { %311 = vst.msk [vmem:[%s498_s20 + $0x20] sm:$0xf] %vm302_vm1, %v294_v15 }
  0x97   : > { %315 = vst.msk [vmem:[%s498_s20 + $0x30] sm:$0xf] %vm302_vm1, %v298_v16 }
  0x98   : > { %304 = vst.msk [vmem:[%s498_s20 + $0x4] sm:$0xf] %vm302_vm1, %v287_v19 }
  0x99   : > { %308 = vst.msk [vmem:[%s498_s20 + $0x14] sm:$0xf] %vm302_vm1, %v291_v20 }
  0x9b   : > { %v268_v21 = vpop.f32.mrf.mxu2  ;;  %v278_v22 = vpop.f32.mrf.mxu3 }
  0x9c   : > { %v295_v23 = vpack.c.bf16 %v268_v21, %v268_v21  ;;  %v299_v24 = vpack.c.bf16 %v278_v22, %v278_v22  ;;  %v251_v25 = vpop.f32.mrf.mxu0  ;;  %v261_v26 = vpop.f32.mrf.mxu1 }
  0x9d   : > { %v288_v27 = vpack.c.bf16 %v251_v25, %v251_v25  ;;  %v292_v28 = vpack.c.bf16 %v261_v26, %v261_v26 }
  0x9e   : > { %312 = vst.msk [vmem:[%s498_s20 + $0x24] sm:$0xf] %vm302_vm1, %v295_v23 }
  0x9f   : > { %316 = vst.msk [vmem:[%s498_s20 + $0x34] sm:$0xf] %vm302_vm1, %v299_v24 }
  0xa0   : > { %305 = vst.msk [vmem:[%s498_s20 + $0x8] sm:$0xf] %vm302_vm1, %v288_v27 }
  0xa1   : > { %309 = vst.msk [vmem:[%s498_s20 + $0x18] sm:$0xf] %vm302_vm1, %v292_v28 }
  0xa3   : > { %v271_v29 = vpop.f32.mrf.mxu2  ;;  %v281_v30 = vpop.f32.mrf.mxu3 }
  0xa4   : > { %v296_v31 = vpack.c.bf16 %v271_v29, %v271_v29  ;;  %v300_v32 = vpack.c.bf16 %v281_v30, %v281_v30  ;;  %v253_v33 = vpop.f32.mrf.mxu0  ;;  %v263_v34 = vpop.f32.mrf.mxu1 }
  0xa5   : > { %v289_v35 = vpack.c.bf16 %v253_v33, %v253_v33  ;;  %v293_v36 = vpack.c.bf16 %v263_v34, %v263_v34 }
  0xa6   : > { %313 = vst.msk [vmem:[%s498_s20 + $0x28] sm:$0xf] %vm302_vm1, %v296_v31 }
  0xa7   : > { %317 = vst.msk [vmem:[%s498_s20 + $0x38] sm:$0xf] %vm302_vm1, %v300_v32 }
  0xa8   : > { %306 = vst.msk [vmem:[%s498_s20 + $0xc] sm:$0xf] %vm302_vm1, %v289_v35 }
  0xa9   : > { %310 = vst.msk [vmem:[%s498_s20 + $0x1c] sm:$0xf] %vm302_vm1, %v293_v36 }
  0xab   : > { %v273_v37 = vpop.f32.mrf.mxu2  ;;  %v283_v38 = vpop.f32.mrf.mxu3 }
  0xac   : > { %v297_v39 = vpack.c.bf16 %v273_v37, %v273_v37  ;;  %v301_v40 = vpack.c.bf16 %v283_v38, %v283_v38 }
  0xae   : > { %314 = vst.msk [vmem:[%s498_s20 + $0x2c] sm:$0xf] %vm302_vm1, %v297_v39 }
  0xaf   : > { %318 = vst.msk [vmem:[%s498_s20 + $0x3c] sm:$0xf] %vm302_vm1, %v301_v40 }
  0xb0 PF: > { %s12_s9 = sadd.s32 1, %s456_s9  }
  0xb1   : > { %p9_p4 = scmp.ge.s32.totalorder %s12_s9, 4  }
  0xb3   :  { %11 = sbr.rel (!%p9_p4) target bundleno = 1 (0x1), region = 58 }

</bundles_post_ra>
